<compile_context>
chip_gen: v5e
topology: v5e:2x2
jax: 0.10.0
libtpu: 0.0.40
codegen_flags: <defaults>
</compile_context>

<pallas_src>
import jax
import jax.numpy as jnp
from jax.experimental import pallas as pl
from jax.experimental.pallas import tpu as pltpu


_LANE_WIDTH = 512            # lane-dense columns (multiple of 128)
_BLOCK_ROWS = 512            # rows per grid step -> 512*512*4 B = 1 MiB/input/block
_PALLAS_MIN_BYTES = 1 << 20  # below this, plain XLA is faster than a pallas_call


def _round_up(x: int, m: int) -> int:
    return (x + m - 1) // m * m


def _l1_partial_kernel(a_ref, b_ref, o_ref):
    """Per-block partial sums of |a - b|, reduced to an (8, C) tile."""
    a = a_ref[...].astype(jnp.float32)
    b = b_ref[...].astype(jnp.float32)
    d = jnp.abs(a - b)
    tm, c = d.shape
    # (tm, C) -> (tm//8, 8, C) only splits the sublane axis (layout-preserving),
    # so the axis-0 sum lowers to plain element-wise vreg adds on the VPU.
    # The expensive cross-lane reduce is deferred to the tiny wrapper-side sum.
    o_ref[...] = jnp.sum(d.reshape(tm // 8, 8, c), axis=0)


def _l1_pallas(a: jax.Array, b: jax.Array) -> jax.Array:
    n = a.size
    c = _LANE_WIDTH

    a_flat = a.reshape(-1)
    b_flat = b.reshape(-1)

    rows = pl.cdiv(n, c)
    tm = min(_BLOCK_ROWS, _round_up(rows, 8))
    rows_padded = _round_up(rows, tm)
    grid = rows_padded // tm

    pad = rows_padded * c - n
    if pad:
        # identical zero padding on both inputs -> padded lanes contribute |0-0| = 0
        a_flat = jnp.pad(a_flat, (0, pad))
        b_flat = jnp.pad(b_flat, (0, pad))

    a2 = a_flat.reshape(rows_padded, c)
    b2 = b_flat.reshape(rows_padded, c)

    partials = pl.pallas_call(
        _l1_partial_kernel,
        out_shape=jax.ShapeDtypeStruct((grid * 8, c), jnp.float32),
        grid=(grid,),
        in_specs=[
            pl.BlockSpec((tm, c), lambda i: (i, 0)),
            pl.BlockSpec((tm, c), lambda i: (i, 0)),
        ],
        out_specs=pl.BlockSpec((8, c), lambda i: (i, 0)),
        compiler_params=pltpu.CompilerParams(
            dimension_semantics=("parallel",),  # independent blocks -> megacore-friendly
        ),
    )(a2, b2)

    # single small cross-lane reduce + divide by the TRUE (unpadded) element count
    return jnp.sum(partials) / jnp.float32(n)


def mask_loss(input_seq: jax.Array, output_seq: jax.Array, *, force_pallas: bool = False) -> jax.Array:
    """L1 loss (mean abs error) between two equally-shaped arrays."""
    assert input_seq.shape == output_seq.shape
    nbytes = input_seq.size * input_seq.dtype.itemsize
    if not force_pallas and nbytes < _PALLAS_MIN_BYTES:
        # Tiny inputs: pallas_call launch/pipeline setup exceeds a fused XLA reduce.
        d = input_seq.astype(jnp.float32) - output_seq.astype(jnp.float32)
        return jnp.mean(jnp.abs(d))
    return _l1_pallas(input_seq, output_seq)


class MaskLoss:
    """Mirror of the PyTorch Mask_Loss module (stateless forward, stores last loss)."""
    # TODO(synk): requires_grad_/retain_grad are autograd bookkeeping with no forward-pass effect.

    def __init__(self, **kwargs):
        self.mask_loss = 0.0

    def __call__(self, input_seq, output_seq):
        self.mask_loss = mask_loss(input_seq, output_seq)
        return self.mask_loss


if __name__ == "__main__":
    # Small shapes consistent with the module: [batch, timelength, 180]
    B, T, D = 2, 8, 180
    key = jax.random.PRNGKey(0)
    k1, k2, k3, k4 = jax.random.split(key, 4)
    input_seq = jax.random.normal(k1, (B, T, D), dtype=jnp.float32)
    output_seq = jax.random.normal(k2, (B, T, D), dtype=jnp.float32)

    ref = jnp.mean(jnp.abs(input_seq - output_seq))

    # 1) Pallas path on the small module-shaped example (forced; below auto threshold).
    loss = mask_loss(input_seq, output_seq, force_pallas=True)
    loss = jax.block_until_ready(loss)
    assert jnp.allclose(loss, ref, rtol=1e-5, atol=1e-6), (loss, ref)

    # 2) Module wrapper with auto dispatch (tiny input -> fused XLA fallback).
    loss_mod = MaskLoss()
    loss2 = jax.block_until_ready(loss_mod(input_seq, output_seq))
    assert jnp.allclose(loss2, ref, rtol=1e-5, atol=1e-6), (loss2, ref)

    # 3) Larger input exercising the multi-block pipelined Pallas path (auto dispatch).
    B2, T2, D2 = 2, 2048, 180
    x3 = jax.random.normal(k3, (B2, T2, D2), dtype=jnp.float32)
    y3 = jax.random.normal(k4, (B2, T2, D2), dtype=jnp.float32)
    loss3 = jax.block_until_ready(mask_loss(x3, y3))
    ref3 = jnp.mean(jnp.abs(x3 - y3))
    assert jnp.allclose(loss3, ref3, rtol=1e-4, atol=1e-6), (loss3, ref3)

    print("KERNEL_OK")
</pallas_src>

<mosaic_0001>
module attributes {stable_mosaic.version = 11 : i64} {
  func.func @_l1_partial_kernel(%arg0: i32, %arg1: memref<8x512xf32, #tpu.memory_space<vmem>>, %arg2: memref<8x512xf32, #tpu.memory_space<vmem>>, %arg3: memref<8x512xf32, #tpu.memory_space<vmem>>) attributes {dimension_semantics = [#tpu.dimension_semantics<parallel>], iteration_bounds = array<i64: 1>, scalar_prefetch = 0 : i64, scratch_operands = 0 : i64, tpu.core_type = #tpu.core_type<tc>, window_params = [{transform_indices = @transform_0, window_bounds = array<i64: 8, 512>}, {transform_indices = @transform_1, window_bounds = array<i64: 8, 512>}, {transform_indices = @transform_2, window_bounds = array<i64: 8, 512>}]} {
    %c0 = arith.constant 0 : index
    %c0_0 = arith.constant 0 : index
    %0 = vector.load %arg1[%c0, %c0_0] : memref<8x512xf32, #tpu.memory_space<vmem>>, vector<8x512xf32>
    %c0_1 = arith.constant 0 : index
    %c0_2 = arith.constant 0 : index
    %1 = vector.load %arg2[%c0_1, %c0_2] : memref<8x512xf32, #tpu.memory_space<vmem>>, vector<8x512xf32>
    %2 = arith.subf %0, %1 : vector<8x512xf32>
    %3 = math.absf %2 : vector<8x512xf32>
    %4 = vector.shape_cast %3 : vector<8x512xf32> to vector<1x8x512xf32>
    %cst = arith.constant dense<0.000000e+00> : vector<8x512xf32>
    %5 = vector.multi_reduction <add>, %4, %cst [0] : vector<1x8x512xf32> to vector<8x512xf32>
    %c0_3 = arith.constant 0 : index
    %c0_4 = arith.constant 0 : index
    %6 = vector.load %arg3[%c0_3, %c0_4] : memref<8x512xf32, #tpu.memory_space<vmem>>, vector<8x512xf32>
    tpu.vector_store %arg3[%c0_3, %c0_4], %5 {strides = array<i32>} : memref<8x512xf32, #tpu.memory_space<vmem>>, vector<8x512xf32>,
    return
  }
  func.func @transform_0(%arg0: i32) -> (i32, i32) {
    %c0_i32 = arith.constant 0 : i32
    %c0_i32_0 = arith.constant 0 : i32
    return %arg0, %c0_i32 : i32, i32
  }
  func.func @transform_1(%arg0: i32) -> (i32, i32) {
    %c0_i32 = arith.constant 0 : i32
    %c0_i32_0 = arith.constant 0 : i32
    return %arg0, %c0_i32 : i32, i32
  }
  func.func @transform_2(%arg0: i32) -> (i32, i32) {
    %c0_i32 = arith.constant 0 : i32
    %c0_i32_0 = arith.constant 0 : i32
    return %arg0, %c0_i32 : i32, i32
  }
}

</mosaic_0001>

<bundles_post_ra>
// kernel: tpu_custom_call.1
= control target key start
LH: loop header
LB: loop body
LE: loop exit
PB: predicated region body
PF: predicated region fallthrough
CT: control target
= control target key end

     0   :  { %7 = vsyncpa [#allocation3], 0  ;;  %s190_s0 = inlined_call_operand.hbm [shape: f32[8,512], index: 0, kind: input, shape index: {}]   ;;  %s191_s1 = inlined_call_operand.hbm [shape: f32[8,512], index: 1, kind: input, shape index: {}]   ;;  %s192_s2 = inlined_call_operand.hbm [shape: f32[8,512], index: 2, kind: output, shape index: {}]  }
   0x1   :  { %8 = vsyncpa [#allocation6], 0 }
   0x2   :  { %9 = vsyncpa [#allocation4], 0  ;;  %s15_s11 = sshll.u32 %s190_s0, 4  ;;  %s163_s12 = smov [#allocation2]   ;;  %s16_s11 = int_to_ptr.hbm [resolvable:$true] %s15_s11 }
   0x3   :  { %s17_s13 = sshll.u32 %s163_s12, 4  ;;  %s26_s16 = sshll.u32 %s191_s1, 4  ;;  %s18_s13 = int_to_ptr.vmem [resolvable:$true] %s17_s13  ;;  %s27_s16 = int_to_ptr.hbm [resolvable:$true] %s26_s16 }
   0x4   :  { %20 = dma.hbm_to_vmem [thread:$0]  %s16_s11, 512, %s18_s13, [#allocation3]  }
   0x5   :  { %s164_s17 = smov [#allocation5]  }
   0x6   :  { %s28_s18 = sshll.u32 %s164_s17, 4  ;;  %s29_s18 = int_to_ptr.vmem [resolvable:$true] %s28_s18 }
   0x7   :  { %31 = dma.hbm_to_vmem [thread:$0]  %s27_s16, 512, %s29_s18, [#allocation6]  }
   0x8   :  { %157 = dma.done.wait [#allocation3], 512  }
   0x9   :  { %158 = vsyncadd [#allocation3], 4294966784 }
   0xa   :  { %159 = dma.done.wait [#allocation6], 512  }
   0xb   :  { %160 = vsyncadd [#allocation6], 4294966784  ;;  %v40_v0 = vld [vmem:[#allocation2] sm:$0xff]  ;;  %v41_v2 = vld [vmem:[#allocation2 + $0x8] sm:$0xff]  ;;  %s165_s0 = smov [#allocation7]   ;;  %s71_s21 = sshll.u32 %s192_s2, 4  ;;  %s72_s21 = int_to_ptr.hbm [resolvable:$true] %s71_s21 }
   0xc   :  { %v44_v1 = vld [vmem:[#allocation5] sm:$0xff]  ;;  %v45_v4 = vld [vmem:[#allocation5 + $0x8] sm:$0xff]  ;;  %v42_v5 = vld [vmem:[#allocation2 + $0x10] sm:$0xff]  ;;  %s69_s1 = sshll.u32 %s165_s0, 4  ;;  %s70_s1 = int_to_ptr.vmem [resolvable:$true] %s69_s1 }
   0xd   :  { %v48_v3 = vsub.f32 %v40_v0, %v44_v1  ;;  %v46_v6 = vld [vmem:[#allocation5 + $0x10] sm:$0xff]  ;;  %v49_v7 = vsub.f32 %v41_v2, %v45_v4  ;;  %v43_v9 = vld [vmem:[#allocation2 + $0x18] sm:$0xff] }
   0xe   :  { %v50_v8 = vsub.f32 %v42_v5, %v46_v6  ;;  %v47_v10 = vld [vmem:[#allocation5 + $0x18] sm:$0xff] }
   0xf   :  { %v52_v11 = vand.u32 2147483647, %v48_v3  ;;  %v51_v12 = vsub.f32 %v43_v9, %v47_v10  ;;  %v53_v13 = vand.u32 2147483647, %v49_v7 }
  0x10   :  { %v54_v14 = vand.u32 2147483647, %v50_v8 }
  0x11   :  { %60 = vst [vmem:[#allocation7] sm:$0xff] %v52_v11  ;;  %v55_v15 = vand.u32 2147483647, %v51_v12 }
  0x12   :  { %61 = vst [vmem:[#allocation7 + $0x8] sm:$0xff] %v53_v13 }
  0x13   :  { %62 = vst [vmem:[#allocation7 + $0x10] sm:$0xff] %v54_v14 }
  0x14   :  { %63 = vst [vmem:[#allocation7 + $0x18] sm:$0xff] %v55_v15 }
  0x15   :  { %74 = dma.vmem_to_hbm [thread:$0]  %s70_s1, 512, %s72_s21, [#allocation4]  }
  0x16   :  { %161 = dma.done.wait [#allocation4], 512  }
  0x17   :  { %162 = vsyncadd [#allocation4], 4294966784 }
  0x18   :  { %79 = vsyncpa [#allocation3], 1 }
  0x19   :  { %80 = vsyncpa [#allocation6], 1 }
  0x1a   :  { %81 = vsyncpa [#allocation4], 1 }

</bundles_post_ra>
